<compile_context>
chip_gen: v7x
topology: tpu7x:2x2x1
jax: 0.10.0
libtpu: 0.0.40
codegen_flags: <defaults>
</compile_context>

<pallas_src>
import jax
import jax.numpy as jnp
from jax.experimental import pallas as pl
from jax.experimental.pallas import tpu as pltpu

_LANE_CANDIDATES = (4096, 2048, 1024, 512, 256, 128)  # widest lane-dense slab first
_SUB = 32                            # row-tile multiple (int8 output sublane packing)
_MIN_BLOCK_BYTES = 2 * 1024 * 1024   # never split a block below ~2 MiB of input

_PASSTHROUGH_DTYPES = frozenset(
    jnp.dtype(d) for d in (jnp.float32, jnp.bfloat16, jnp.int32, jnp.int8))


def _cdiv(a, b):
    return -(-a // b)


def _round_up(a, m):
    return _cdiv(a, m) * m


def _chip_config():
    """(tensorcores_per_chip, per-(in+out)-block byte budget, vmem_limit_bytes)."""
    kind = ""
    try:
        kind = jax.devices()[0].device_kind.lower()
    except Exception:
        pass
    if "v7" in kind or "7x" in kind:
        # 2 TCs, only 64 MiB physical VMEM: 8 MiB f32 in + 2 MiB int8 out per
        # block; double-buffered footprint ~20 MiB.
        return 2, 10 * 1024 * 1024, 32 * 1024 * 1024
    if "v6" in kind:
        # 1 TC, 128 MiB physical VMEM: push to 16 MiB f32 in + 4 MiB int8 out.
        return 1, 20 * 1024 * 1024, 48 * 1024 * 1024
    # v5e / v5p / v4 / unknown: conservative 8 MiB f32 in + 2 MiB int8 out.
    return 1, 10 * 1024 * 1024, 28 * 1024 * 1024


def _choose_lanes(n):
    for w in _LANE_CANDIDATES:
        if n % w == 0:
            return w
    return 128


def _choose_tile_rows(rows, lanes, itemsize, pair_budget, num_tc):
    """Largest budget-fitting row tile; split only on multi-TC chips (evenly)."""
    per_elem = itemsize + 1                             # input bytes + int8 output
    max_elems = max(_SUB * lanes, pair_budget // per_elem)
    max_rows = max(_SUB, (max_elems // lanes) // _SUB * _SUB)

    if num_tc > 1:
        min_rows = max(_SUB, _round_up(max(1, _MIN_BLOCK_BYTES // itemsize // lanes), _SUB))
        if rows >= 2 * min_rows:
            # Smallest even step count whose blocks fit the budget -> balanced
            # work on both TensorCores, blocks never below ~2 MiB.
            steps = 2
            cand = _round_up(_cdiv(rows, steps), _SUB)
            while cand > max_rows:
                steps += 2
                cand = _round_up(_cdiv(rows, steps), _SUB)
            return min(max(cand, min_rows), rows)

    # Single TC (or too small to split): one block if it fits, else the largest
    # budget-sized block; the ragged last block is masked by Pallas.
    return rows if rows <= max_rows else max_rows


def _quantize_bulk(x2, tile_rows, scale_val, scale_arr, vmem_limit):
    rows, lanes = x2.shape
    n = rows * lanes
    grid = (_cdiv(rows, tile_rows),)
    cost = pl.CostEstimate(flops=3 * n, transcendentals=0,
                           bytes_accessed=n * x2.dtype.itemsize + n)
    cparams = pltpu.CompilerParams(dimension_semantics=("parallel",),
                                   vmem_limit_bytes=vmem_limit)
    out_shape = jax.ShapeDtypeStruct((rows, lanes), jnp.int8)

    if scale_arr is None:
        s = float(scale_val)                          # baked into the kernel

        def kernel(x_ref, o_ref):
            x = x_ref[...].astype(jnp.float32)        # in-register cast (VPU)
            o_ref[...] = jnp.clip(jnp.round(x * s), -127.0, 127.0).astype(jnp.int8)

        grid_spec = pltpu.PrefetchScalarGridSpec(
            num_scalar_prefetch=0, grid=grid,
            in_specs=[pl.BlockSpec((tile_rows, lanes), lambda i: (i, 0))],
            out_specs=pl.BlockSpec((tile_rows, lanes), lambda i: (i, 0)))
        operands = (x2,)
    else:
        def kernel(scale_ref, x_ref, o_ref):          # scale resident in SMEM
            x = x_ref[...].astype(jnp.float32)
            o_ref[...] = jnp.clip(jnp.round(x * scale_ref[0]),
                                  -127.0, 127.0).astype(jnp.int8)

        grid_spec = pltpu.PrefetchScalarGridSpec(
            num_scalar_prefetch=1, grid=grid,
            in_specs=[pl.BlockSpec((tile_rows, lanes), lambda i, s_ref: (i, 0))],
            out_specs=pl.BlockSpec((tile_rows, lanes), lambda i, s_ref: (i, 0)))
        operands = (scale_arr, x2)

    return pl.pallas_call(
        kernel, out_shape=out_shape, grid_spec=grid_spec,
        compiler_params=cparams, cost_estimate=cost)(*operands)


def tensor_quantizer_forward(x, amax=1.0, *, block_budget_bytes=None):
    """JAX/Pallas equivalent of TensorQuantizer.forward (per-tensor int8 quant)."""
    x = jnp.asarray(x)
    orig_shape = x.shape
    if jnp.dtype(x.dtype) not in _PASSTHROUGH_DTYPES:
        # TODO(synk): rare dtypes (fp16/int16/uint8/...) take one extra cast pass.
        x = x.astype(jnp.float32)

    n = x.size
    if n == 0:
        return jnp.zeros(orig_shape, jnp.int8)

    if isinstance(amax, (int, float)):
        scale_val, scale_arr = 127.0 / float(amax), None
    else:
        scale_val = None
        scale_arr = (jnp.float32(127.0) /
                     jnp.asarray(amax, jnp.float32).reshape(())).reshape((1,))

    num_tc, pair_budget, vmem_limit = _chip_config()
    if block_budget_bytes is not None:                # test / tuning override
        pair_budget = int(block_budget_bytes)

    xf = jnp.ravel(x)
    n_bulk = (n // 128) * 128                         # kernel handles aligned bulk
    pieces = []
    if n_bulk:
        lanes = _choose_lanes(n_bulk)
        rows = n_bulk // lanes
        tile_rows = _choose_tile_rows(rows, lanes, x.dtype.itemsize,
                                      pair_budget, num_tc)
        x2 = (xf if n_bulk == n else xf[:n_bulk]).reshape(rows, lanes)
        pieces.append(_quantize_bulk(x2, tile_rows, scale_val, scale_arr,
                                     vmem_limit).reshape(-1))
    if n_bulk < n:
        # <=127-element tail in plain jnp: avoids jnp.pad / output-slice passes.
        tail = xf[n_bulk:].astype(jnp.float32)
        s = scale_val if scale_arr is None else scale_arr[0]
        pieces.append(jnp.clip(jnp.round(tail * s), -127.0, 127.0).astype(jnp.int8))

    out_flat = pieces[0] if len(pieces) == 1 else jnp.concatenate(pieces)
    return out_flat.reshape(orig_shape)


def _reference(x, amax):
    scale = jnp.float32(127.0) / jnp.asarray(amax, jnp.float32)
    return jnp.clip(jnp.round(jnp.asarray(x).astype(jnp.float32) * scale),
                    -127.0, 127.0).astype(jnp.int8)


if __name__ == "__main__":
    key = jax.random.PRNGKey(0)
    ks = jax.random.split(key, 6)

    # 1) Small NCHW-style input, default amax=1.0 (python float -> baked scale).
    x = jax.random.normal(ks[0], (2, 4, 16, 16), jnp.float32) * 3.0
    out = jax.block_until_ready(tensor_quantizer_forward(x, 1.0))
    assert out.dtype == jnp.int8 and out.shape == x.shape
    assert bool(jnp.all(out == _reference(x, 1.0)))

    # 2) Traced amax (device scalar) -> scalar-prefetch SMEM path, with clipping.
    amax2 = jnp.float32(2.5)
    x2 = jax.random.normal(ks[1], (4, 32, 512), jnp.float32) * 2.0
    out2 = jax.block_until_ready(tensor_quantizer_forward(x2, amax2))
    assert bool(jnp.all(out2 == _reference(x2, amax2)))

    # 3) Multi-step grid + ragged last row block (small block-budget override).
    x3 = jax.random.normal(ks[2], (33, 128), jnp.float32) * 4.0
    out3 = jax.block_until_ready(
        tensor_quantizer_forward(x3, 1.0, block_budget_bytes=20480))
    assert bool(jnp.all(out3 == _reference(x3, 1.0)))

    # 4) Element count not a multiple of 128 -> aligned bulk + tiny jnp tail.
    x4 = jax.random.normal(ks[3], (3, 5, 7, 11), jnp.float32) * 3.0
    out4 = jax.block_until_ready(tensor_quantizer_forward(x4, 1.0))
    assert bool(jnp.all(out4 == _reference(x4, 1.0)))

    # 5) bf16 input read natively (no wrapper-side cast, cast in-register).
    x5 = (jax.random.normal(ks[4], (2, 8, 64), jnp.float32) * 2.0).astype(jnp.bfloat16)
    out5 = jax.block_until_ready(tensor_quantizer_forward(x5, 1.5))
    assert bool(jnp.all(out5 == _reference(x5, 1.5)))

    # 6) Integer input passed through untouched; cast to f32 inside the kernel.
    x6 = jax.random.randint(ks[5], (4, 256), -5, 6, dtype=jnp.int32)
    out6 = jax.block_until_ready(tensor_quantizer_forward(x6, 3.0))
    assert bool(jnp.all(out6 == _reference(x6, 3.0)))

    print("KERNEL_OK")
</pallas_src>

<mosaic_0001>
module attributes {stable_mosaic.version = 11 : i64} {
  func.func @kernel(%arg0: i32, %arg1: memref<1x2048xf32, #tpu.memory_space<vmem>>, %arg2: memref<1x2048xi8, #tpu.memory_space<vmem>>) attributes {dimension_semantics = [#tpu.dimension_semantics<parallel>], iteration_bounds = array<i64: 1>, scalar_prefetch = 0 : i64, scratch_operands = 0 : i64, tpu.core_type = #tpu.core_type<tc>, window_params = [{transform_indices = @transform_0, window_bounds = array<i64: 1, 2048>}, {transform_indices = @transform_1, window_bounds = array<i64: 1, 2048>}]} {
    %c0 = arith.constant 0 : index
    %c0_0 = arith.constant 0 : index
    %0 = vector.load %arg1[%c0, %c0_0] : memref<1x2048xf32, #tpu.memory_space<vmem>>, vector<1x2048xf32>
    %cst = arith.constant 1.270000e+02 : f32
    %1 = vector.broadcast %cst : f32 to vector<1x2048xf32>
    %2 = arith.mulf %0, %1 : vector<1x2048xf32>
    %3 = math.roundeven %2 : vector<1x2048xf32>
    %cst_1 = arith.constant -1.270000e+02 : f32
    %cst_2 = arith.constant 1.270000e+02 : f32
    %4 = vector.broadcast %cst_1 : f32 to vector<1x2048xf32>
    %5 = arith.maximumf %4, %3 : vector<1x2048xf32>
    %6 = vector.broadcast %cst_2 : f32 to vector<1x2048xf32>
    %7 = arith.minimumf %6, %5 : vector<1x2048xf32>
    %8 = arith.fptosi %7 : vector<1x2048xf32> to vector<1x2048xi8>
    %c0_3 = arith.constant 0 : index
    %c0_4 = arith.constant 0 : index
    %9 = vector.load %arg2[%c0_3, %c0_4] : memref<1x2048xi8, #tpu.memory_space<vmem>>, vector<1x2048xi8>
    tpu.vector_store %arg2[%c0_3, %c0_4], %8 {strides = array<i32>} : memref<1x2048xi8, #tpu.memory_space<vmem>>, vector<1x2048xi8>,
    return
  }
  func.func @transform_0(%arg0: i32) -> (i32, i32) {
    %c0_i32 = arith.constant 0 : i32
    %c0_i32_0 = arith.constant 0 : i32
    return %arg0, %c0_i32 : i32, i32
  }
  func.func @transform_1(%arg0: i32) -> (i32, i32) {
    %c0_i32 = arith.constant 0 : i32
    %c0_i32_0 = arith.constant 0 : i32
    return %arg0, %c0_i32 : i32, i32
  }
}

</mosaic_0001>

<bundles_post_ra>
// kernel: tpu_custom_call.1
= control target key start
LH: loop header
LB: loop body
LE: loop exit
PB: predicated region body
PF: predicated region fallthrough
CT: control target
= control target key end

     0   :  { %6 = vsyncpa [#allocation3], 0  ;;  %s582_s0 = inlined_call_operand.hbm [shape: f32[1,2048], index: 0, kind: input, shape index: {}]   ;;  %s583_s1 = inlined_call_operand.hbm [shape: s8[1,2048], index: 1, kind: output, shape index: {}]  }
   0x1   :  { %7 = vsyncpa [#allocation4], 0  ;;  %s438_s6 = smov [#allocation2]   ;;  %s390_s10 = scalar_lea.hbm %s582_s0, 256 }
   0x2   :  { %s14_s7 = sshll.u32 %s438_s6, 4  ;;  %p391_p0 = scmp.ne.s32.totalorder %s582_s0, %s390_s10  ;;  %s15_s7 = int_to_ptr.vmem [resolvable:$true] %s14_s7 }
   0x3   :  { %p394_p1 = scmp.lt.u32.totalorder %s390_s10, %s582_s0 }
   0x5   :  { %p396_p2 = pnand %p394_p1, %p391_p0 }
   0x7   :  { %399 = shalt.err (!%p396_p2)
}
   0x8   :  { %s400_s15 = scalar_lea.vmem %s15_s7, 256  ;;  %p405_p4 = scmp.lt.s32.totalorder %s15_s7, %s15_s7 }
   0x9   :  { %p401_p3 = scmp.ne.s32.totalorder %s15_s7, %s400_s15  ;;  %p406_p5 = scmp.lt.s32.totalorder %s400_s15, %s400_s15 }
   0xb   :  { %p407_p6 = por %p406_p5, %p405_p4 }
   0xd   :  { %p408_p7 = pnand %p407_p6, %p401_p3 }
   0xf   :  { %411 = shalt.err (!%p408_p7)
}
  0x10   :  { %17 = dma.hbm_to_vmem [thread:$0]  %s582_s0, 256, %s15_s7, [#allocation3]  }
  0x11   :  { %434 = dma.done.wait [#allocation3], 256  }
  0x12   :  { %435 = vsyncadd [#allocation3], 4294967040  ;;  %vm323_vm0 = vcmask 1040384   ;;  %vm326_vm1 = vcmask 1041409   ;;  %v33_v0 = vlaneseq  ;;  %vm324_vm2 = vsmask.f32 0 }
  0x13   :  { %vm327_vm3 = vsmask.f32 1024  ;;  %vm463_vm4 = vmand %vm323_vm0, %vm324_vm2  ;;  %v439_v3 = vmov 1966171168   ;;  %vm330_vm6 = vcmask 1042434   ;;  %v21_v6 = vld [vmem:[#allocation2] sm:$0xff] }
  0x14   :  { %vm467_vm5 = vmand %vm326_vm1, %vm327_vm3  ;;  %v230_v4 = vunpack.c.l.s4 %v439_v3  ;;  %vm331_vm7 = vsmask.f32 2048  ;;  %v471_v5 = vshrl.u32 %v33_v0, 7  ;;  %v23_v7 = vmul.f32 127.0, %v21_v6  ;;  %v22_v9 = vld [vmem:[#allocation2 + $0x8] sm:$0xff]  ;;  %s440_s0 = smov [#allocation5]  }
  0x15   :  { %vm329_vm8 = vmor %vm467_vm5, %vm463_vm4  ;;  %vm334_vm10 = vcmask 1043459   ;;  %vm335_vm11 = vsmask.f32 3072  ;;  %vm338_vm12 = vcmask 1044484   ;;  %v24_v12 = vmul.f32 127.0, %v22_v9  ;;  %s366_s18 = sshll.u32 %s440_s0, 4  ;;  %s367_s18 = int_to_ptr.vmem [resolvable:$true] %s366_s18 }
  0x16   :  { %vm332_vm9 = vmand %vm330_vm6, %vm331_vm7  ;;  %v231_v8 = vunpack.c.0.s8 %v230_v4  ;;  %v35_v10 = vsub.s32 0, %v471_v5  ;;  %v39_v11 = vsub.s32 1, %v471_v5  ;;  %v385_v13 = vround.rtne.f32 %v23_v7  ;;  %s412_s19 = scalar_lea.vmem %s367_s18, 256  ;;  %p417_p9 = scmp.lt.s32.totalorder %s367_s18, %s367_s18 }
  0x17   :  { %v43_v14 = vsub.s32 2, %v471_v5  ;;  %v47_v15 = vsub.s32 3, %v471_v5  ;;  %v51_v16 = vsub.s32 4, %v471_v5  ;;  %vm487_vm13 = vmor %vm332_vm9, %vm329_vm8  ;;  %v55_v18 = vsub.s32 5, %v471_v5  ;;  %p413_p8 = scmp.ne.s32.totalorder %s367_s18, %s412_s19  ;;  %p418_p10 = scmp.lt.s32.totalorder %s412_s19, %s412_s19 }
  0x18   :  { %v59_v19 = vsub.s32 6, %v471_v5  ;;  %v63_v20 = vsub.s32 7, %v471_v5  ;;  %vm495_vm14 = vmand %vm334_vm10, %vm335_vm11  ;;  %v386_v22 = vround.rtne.f32 %v24_v12  ;;  %v375_v23 = vclamps-f32 %v385_v13, 127.0 }
  0x19   :  { %v500_v24 = vsub.s32 %v231_v8, %v471_v5  ;;  %vm339_vm15 = vsmask.f32 4096  ;;  %vm342_vm0 = vcmask 1045509   ;;  %vm343_vm1 = vsmask.f32 5120  ;;  %vm337_vm4 = vmor %vm495_vm14, %vm487_vm13  ;;  %p419_p11 = por %p418_p10, %p417_p9 }
  0x1a   :  { %vm346_vm2 = vcmask 1046534   ;;  %vm347_vm3 = vsmask.f32 6144  ;;  %v376_v25 = vclamps-f32 %v386_v22, 127.0  ;;  %v36_v26 = vrot.slane %v375_v23, %v35_v10  ;;  %vm340_vm5 = vmand %vm338_vm12, %vm339_vm15 }
  0x1b   :  { %v40_v27 = vrot.slane %v375_v23, %v39_v11  ;;  %v44_v28 = vrot.slane %v375_v23, %v43_v14  ;;  %v48_v29 = vrot.slane %v375_v23, %v47_v15  ;;  %v52_v30 = vrot.slane %v375_v23, %v51_v16  ;;  %vm513_vm8 = vmor %vm340_vm5, %vm337_vm4  ;;  %p420_p12 = pnand %p419_p11, %p413_p8 }
  0x1c   :  { %v56_v31 = vrot.slane %v375_v23, %v55_v18  ;;  %v60_v32 = vrot.slane %v375_v23, %v59_v19  ;;  %v64_v33 = vrot.slane %v375_v23, %v63_v20  ;;  %v113_v34 = vtrunc.f32 %v36_v26  ;;  %vm519_vm9 = vmand %vm342_vm0, %vm343_vm1 }
  0x1d   :  { %v114_v35 = vtrunc.f32 %v40_v27  ;;  %v115_v36 = vtrunc.f32 %v44_v28  ;;  %v116_v37 = vtrunc.f32 %v48_v29  ;;  %vm350_vm6 = vcmask 1047559   ;;  %vm345_vm10 = vmor %vm519_vm9, %vm513_vm8  ;;  %v354_v29 = vld [vmem:[#allocation5] sm:$0xff] }
  0x1e   :  { %vm351_vm7 = vsmask.f32 7168  ;;  %v117_v38 = vtrunc.f32 %v52_v30  ;;  %v118_v39 = vtrunc.f32 %v56_v31  ;;  %v119_v40 = vtrunc.f32 %v60_v32  ;;  %vm348_vm11 = vmand %vm346_vm2, %vm347_vm3 }
  0x1f   :  { %v120_v41 = vtrunc.f32 %v64_v33  ;;  %v129_v42 = vpack.c.f32.eXmY %v113_v34, %v113_v34, 312  ;;  %v135_v43 = vpack.c.f32.eXmY %v114_v35, %v114_v35, 312  ;;  %v68_v45 = vrot.slane %v376_v25, %v35_v10  ;;  %vm538_vm12 = vmor %vm348_vm11, %vm345_vm10 }
  0x20   :  { %v72_v46 = vrot.slane %v376_v25, %v39_v11  ;;  %v141_v47 = vpack.c.f32.eXmY %v115_v36, %v115_v36, 312  ;;  %v147_v48 = vpack.c.f32.eXmY %v116_v37, %v116_v37, 312  ;;  %v76_v50 = vrot.slane %v376_v25, %v43_v14  ;;  %vm545_vm13 = vmand %vm350_vm6, %vm351_vm7 }
  0x21   :  { %v80_v51 = vrot.slane %v376_v25, %v47_v15  ;;  %v153_v52 = vpack.c.f32.eXmY %v117_v38, %v117_v38, 312  ;;  %v159_v53 = vpack.c.f32.eXmY %v118_v39, %v118_v39, 312  ;;  %v377_v54 = vpack.c.b8 %v135_v43, %v129_v42  ;;  %vm353_vm14 = vmor %vm545_vm13, %vm538_vm12  ;;  %v357_v42 = vld [vmem:[#allocation5 + $0x8] sm:$0xff] }
  0x22   :  { %v84_v55 = vrot.slane %v376_v25, %v51_v16  ;;  %v165_v56 = vpack.c.f32.eXmY %v119_v40, %v119_v40, 312  ;;  %v171_v57 = vpack.c.f32.eXmY %v120_v41, %v120_v41, 312  ;;  %v378_v58 = vpack.c.b8 %v147_v48, %v141_v47 }
  0x23   :  { %v88_v59 = vrot.slane %v376_v25, %v55_v18  ;;  %v379_v60 = vpack.c.b8 %v159_v53, %v153_v52  ;;  %v235_v61 = vrot.slane %v377_v54, %v500_v24  ;;  %v92_v62 = vrot.slane %v376_v25, %v59_v19 }
  0x24   :  { %v96_v63 = vrot.slane %v376_v25, %v63_v20  ;;  %v380_v0 = vpack.c.b8 %v171_v57, %v165_v56  ;;  %v242_v1 = vrot.slane %v378_v58, %v500_v24  ;;  %v121_v2 = vtrunc.f32 %v68_v45 }
  0x25   :  { %v122_v3 = vtrunc.f32 %v72_v46  ;;  %v249_v4 = vrot.slane %v379_v60, %v500_v24  ;;  %v123_v5 = vtrunc.f32 %v76_v50  ;;  %v124_v6 = vtrunc.f32 %v80_v51 }
  0x26   :  { %v125_v7 = vtrunc.f32 %v84_v55  ;;  %v256_v8 = vrot.slane %v380_v0, %v500_v24  ;;  %v257_v9 = vcombine.low %v235_v61, %v242_v1  ;;  %v126_v10 = vtrunc.f32 %v88_v59 }
  0x27   :  { %v127_v11 = vtrunc.f32 %v92_v62  ;;  %v128_v13 = vtrunc.f32 %v96_v63  ;;  %v177_v14 = vpack.c.f32.eXmY %v121_v2, %v121_v2, 312  ;;  %v183_v15 = vpack.c.f32.eXmY %v122_v3, %v122_v3, 312 }
  0x28   :  { %v258_v16 = vcombine.low %v249_v4, %v256_v8  ;;  %v265_v17 = vrot.slane %v257_v9, %v500_v24  ;;  %v189_v19 = vpack.c.f32.eXmY %v123_v5, %v123_v5, 312  ;;  %v195_v20 = vpack.c.f32.eXmY %v124_v6, %v124_v6, 312 }
  0x29   :  { %v201_v21 = vpack.c.f32.eXmY %v125_v7, %v125_v7, 312  ;;  %v207_v22 = vpack.c.f32.eXmY %v126_v10, %v126_v10, 312  ;;  %v381_v23 = vpack.c.b8 %v183_v15, %v177_v14 }
  0x2a   :  { %v272_v25 = vrot.slane %v258_v16, %v500_v24  ;;  %v213_v26 = vpack.c.f32.eXmY %v127_v11, %v127_v11, 312  ;;  %v219_v27 = vpack.c.f32.eXmY %v128_v13, %v128_v13, 312  ;;  %v382_v28 = vpack.c.b8 %v195_v20, %v189_v19 }
  0x2b   :  { %v383_v30 = vpack.c.b8 %v207_v22, %v201_v21  ;;  %v284_v31 = vrot.slane %v381_v23, %v500_v24 }
  0x2c   :  { %v273_v32 = vcombine.low %v265_v17, %v272_v25  ;;  %v384_v33 = vpack.c.b8 %v219_v27, %v213_v26  ;;  %v291_v34 = vrot.slane %v382_v28, %v500_v24 }
  0x2d   :  { %v298_v35 = vrot.slane %v383_v30, %v500_v24 }
  0x2e   :  { %v355_v36 = vsel %vm353_vm14, %v273_v32, %v354_v29  ;;  %v305_v37 = vrot.slane %v384_v33, %v500_v24  ;;  %v306_v38 = vcombine.low %v284_v31, %v291_v34 }
  0x2f   :  { %356 = vst [vmem:[#allocation5] sm:$0xff] %v355_v36 }
  0x30   :  { %v307_v39 = vcombine.low %v298_v35, %v305_v37  ;;  %v314_v40 = vrot.slane %v306_v38, %v500_v24 }
  0x32   :  { %v321_v41 = vrot.slane %v307_v39, %v500_v24 }
  0x34   :  { %v322_v43 = vcombine.low %v314_v40, %v321_v41 }
  0x36   :  { %v358_v44 = vsel %vm353_vm14, %v322_v43, %v357_v42 }
  0x37   :  { %359 = vst [vmem:[#allocation5 + $0x8] sm:$0xff] %v358_v44 }
  0x38   :  { %423 = shalt.err (!%p420_p12)
}
  0x39   :  { %s424_s22 = scalar_lea.hbm %s583_s1, 256 }
  0x3a   :  { %p425_p13 = scmp.ne.s32.totalorder %s583_s1, %s424_s22  ;;  %p428_p0 = scmp.lt.u32.totalorder %s424_s22, %s583_s1 }
  0x3c   :  { %p430_p1 = pnand %p428_p0, %p425_p13 }
  0x3e   :  { %433 = shalt.err (!%p430_p1)
}
  0x3f   :  { %369 = dma.vmem_to_hbm [thread:$0]  %s367_s18, 256, %s583_s1, [#allocation4]  }
  0x40   :  { %436 = dma.done.wait [#allocation4], 256  }
  0x41   :  { %437 = vsyncadd [#allocation4], 4294967040 }
  0x42   :  { %373 = vsyncpa [#allocation3], 1 }
  0x43   :  { %374 = vsyncpa [#allocation4], 1 }

</bundles_post_ra>
